<compile_context>
chip_gen: v5e
topology: v5e:2x2
jax: 0.10.0
libtpu: 0.0.40
codegen_flags: <defaults>
</compile_context>

<pallas_src>
import jax
import jax.numpy as jnp
from jax import lax
from jax.experimental import pallas as pl
from jax.experimental.pallas import tpu as pltpu

B = 2          # batch
T = 8          # sequence length
H = 24         # LSTM hidden size
H1 = 24        # MLP hidden
D_OUT = 1      # MLP output

# Padded, vreg-friendly sizes (f32 vreg = 8 sublanes x 128 lanes).
BP = 8         # batch padded to the sublane grain
HP = 32        # hidden padded (matmul contraction dim)
GP = 4 * HP    # packed gates i|f|g|o, each padded to HP -> 128 lanes total
H1P = 128      # MLP hidden padded to a full lane width


def lstm_mlp_kernel(x_ref,      # (T, BP, 1)   time-major input (zero-padded batch)
                    h0_ref,     # (BP, HP)     initial hidden  (zero-padded)
                    c0_ref,     # (BP, HP)     initial cell    (zero-padded)
                    wih_ref,    # (1, 1, GP)   packed input weights (per-gate 32-lane blocks)
                    whh_ref,    # (HP, GP)     packed hidden weights (pre-transposed)
                    b_ref,      # (1, 1, GP)   packed bias b_ih + b_hh
                    w1_ref,     # (HP, H1P)    linear1 weight^T (zero-padded)
                    b1_ref,     # (1, H1P)
                    w2_ref,     # (1, H1P)     linear2 weight row (zero-padded)
                    b2_ref,     # (1, 1)
                    out_ref):   # (BP, 1)
    n_steps = x_ref.shape[0]

    # Hoist the packed hidden weights out of the recurrent loop: the RHS of every
    # unrolled dot is identical, letting the MXU keep it weight-stationary.
    whh = whh_ref[...]                                        # (HP, GP)

    # input_size == 1: the input projection is a broadcast multiply.  Precompute
    # xb[t] = x[t] * W_ih_packed + (b_ih + b_hh) for ALL timesteps in one shot.
    xb = x_ref[...] * wih_ref[...] + b_ref[...]               # (T, BP, GP)

    h = h0_ref[...]                                           # (BP, HP)
    c = c0_ref[...]                                           # (BP, HP)

    # Fully-unrolled recurrence (T is small and static).  One fused 8x32x128 MXU
    # matmul per step; PyTorch gate order i, f, g, o in 32-lane blocks of `gates`.
    for t in range(n_steps):
        gates = jnp.dot(h, whh, preferred_element_type=jnp.float32) + xb[t]   # (BP, GP)
        # Two full-width transcendental evaluations instead of four partial ones:
        #   sig = sigmoid(gates) via EUP exp + EUP approx-reciprocal
        #   th  = tanh(gates)    via EUP tanh
        sig = pl.reciprocal(1.0 + jnp.exp(-gates), approx=True)              # (BP, GP)
        th = jnp.tanh(gates)                                                  # (BP, GP)
        i = sig[:, 0 * HP:1 * HP]
        f = sig[:, 1 * HP:2 * HP]
        g = th[:, 2 * HP:3 * HP]
        o = sig[:, 3 * HP:4 * HP]
        c = f * c + i * g
        h = o * jnp.tanh(c)

    # MLP head on the final hidden state h_n (matches self.out(h_n)).
    z = jnp.dot(h, w1_ref[...], preferred_element_type=jnp.float32) + b1_ref[...]   # (BP, H1P)
    z = jnp.maximum(z, 0.0)
    # Output width 1: VPU multiply + lane reduction instead of an MXU pass.
    z2 = jnp.sum(z * w2_ref[...], axis=-1, keepdims=True) + b2_ref[...]              # (BP, 1)
    out_ref[...] = jnp.maximum(z2, 0.0)


@jax.jit
def rnn_forward(x, h_state, c_state, packed):
    """x: (B, T, 1), h_state/c_state: (1, B, H) as in PyTorch. Returns (1, B, 1).

    Fully jitted: the padding/transpose prologue and the output slice fuse around the
    pallas_call instead of dispatching as separate XLA ops.
    """
    wih_p, whh_p, b_p, w1_p, b1_p, w2_p, b2_p = packed
    b, t, _ = x.shape
    x_tmaj = jnp.transpose(x, (1, 0, 2))                                  # (T, B, 1)
    x_pad = jnp.zeros((t, BP, 1), jnp.float32).at[:, :b, :].set(x_tmaj)   # (T, BP, 1)
    h0 = jnp.zeros((BP, HP), jnp.float32).at[:b, :H].set(h_state[0])      # (BP, HP)
    c0 = jnp.zeros((BP, HP), jnp.float32).at[:b, :H].set(c_state[0])      # (BP, HP)

    vmem = pl.BlockSpec(memory_space=pltpu.MemorySpace.VMEM)
    out = pl.pallas_call(
        lstm_mlp_kernel,
        out_shape=jax.ShapeDtypeStruct((BP, 1), jnp.float32),
        in_specs=[vmem] * 10,
        out_specs=vmem,
    )(x_pad, h0, c0, wih_p, whh_p, b_p, w1_p, b1_p, w2_p, b2_p)

    return out[:b][None, :, :]                                            # (1, B, 1)


def init_params(key):
    """Deterministic synthetic parameters, PyTorch-style uniform init, packed for the kernel."""
    ks = jax.random.split(key, 8)
    s = 1.0 / jnp.sqrt(jnp.float32(H))
    # LSTM raw params (PyTorch shapes): W_ih (4H, 1), W_hh (4H, H), b_ih/b_hh (4H,)
    w_ih = jax.random.uniform(ks[0], (4 * H, 1), jnp.float32, -s, s)
    w_hh = jax.random.uniform(ks[1], (4 * H, H), jnp.float32, -s, s)
    b_ih = jax.random.uniform(ks[2], (4 * H,), jnp.float32, -s, s)
    b_hh = jax.random.uniform(ks[3], (4 * H,), jnp.float32, -s, s)
    # Linear layers: weight (out, in), bias (out,)
    s1 = 1.0 / jnp.sqrt(jnp.float32(H))
    w1 = jax.random.uniform(ks[4], (H1, H), jnp.float32, -s1, s1)
    b1 = jax.random.uniform(ks[5], (H1,), jnp.float32, -s1, s1)
    s2 = 1.0 / jnp.sqrt(jnp.float32(H1))
    w2 = jax.random.uniform(ks[6], (D_OUT, H1), jnp.float32, -s2, s2)
    b2 = jax.random.uniform(ks[7], (D_OUT,), jnp.float32, -s2, s2)

    # --- kernel-friendly packing: fused gates, zero-padded to vreg grain ---
    def pack_gate_row(v):                    # v: (4H,) -> (GP,) with per-gate 32-lane blocks
        out = jnp.zeros((GP,), jnp.float32)
        for k in range(4):
            out = out.at[k * HP:k * HP + H].set(v[k * H:(k + 1) * H])
        return out

    wih_p = pack_gate_row(w_ih[:, 0]).reshape(1, 1, GP)          # (1, 1, GP)
    b_p = pack_gate_row(b_ih + b_hh).reshape(1, 1, GP)           # (1, 1, GP)

    whh_p = jnp.zeros((HP, GP), jnp.float32)                     # (HP, GP)
    for k in range(4):
        whh_p = whh_p.at[:H, k * HP:k * HP + H].set(w_hh[k * H:(k + 1) * H, :].T)

    w1_p = jnp.zeros((HP, H1P), jnp.float32).at[:H, :H1].set(w1.T)   # (HP, H1P)
    b1_p = jnp.zeros((1, H1P), jnp.float32).at[0, :H1].set(b1)       # (1, H1P)
    w2_p = jnp.zeros((1, H1P), jnp.float32).at[0, :H1].set(w2[0])    # (1, H1P)
    b2_p = b2.reshape(1, 1)                                          # (1, 1)

    packed = (wih_p, whh_p, b_p, w1_p, b1_p, w2_p, b2_p)
    raw = dict(w_ih=w_ih, w_hh=w_hh, b_ih=b_ih, b_hh=b_hh, w1=w1, b1=b1, w2=w2, b2=b2)
    return packed, raw


def reference_forward(x, h_state, c_state, raw):
    """Pure-JAX reference matching torch.nn.LSTM + MLP head (exact sigmoid/tanh)."""
    p = raw
    h = h_state[0]
    c = c_state[0]

    def step(carry, x_t):
        h, c = carry
        gates = x_t @ p["w_ih"].T + h @ p["w_hh"].T + p["b_ih"] + p["b_hh"]
        i = jax.nn.sigmoid(gates[:, 0 * H:1 * H])
        f = jax.nn.sigmoid(gates[:, 1 * H:2 * H])
        g = jnp.tanh(gates[:, 2 * H:3 * H])
        o = jax.nn.sigmoid(gates[:, 3 * H:4 * H])
        c_new = f * c + i * g
        h_new = o * jnp.tanh(c_new)
        return (h_new, c_new), None

    (h_n, _), _ = lax.scan(step, (h, c), jnp.transpose(x, (1, 0, 2)))
    z = jnp.maximum(h_n @ p["w1"].T + p["b1"], 0.0)
    z = jnp.maximum(z @ p["w2"].T + p["b2"], 0.0)
    return z[None, :, :]


if __name__ == "__main__":
    key = jax.random.PRNGKey(0)
    k_x, k_h, k_c, k_p = jax.random.split(key, 4)

    x = jax.random.normal(k_x, (B, T, 1), jnp.float32)        # batch_first input
    h_state = jax.random.normal(k_h, (1, B, H), jnp.float32)  # (num_layers, B, H)
    c_state = jax.random.normal(k_c, (1, B, H), jnp.float32)
    y = jnp.zeros((B, T, 1), jnp.float32)                     # unused, as in PyTorch forward

    packed, raw = init_params(k_p)

    out = rnn_forward(x, h_state, c_state, packed)
    out = jax.block_until_ready(out)

    ref = jax.block_until_ready(reference_forward(x, h_state, c_state, raw))
    assert out.shape == (1, B, 1)
    # Tolerance loosened vs. 1e-5 because the kernel's sigmoid uses the EUP
    # approximate reciprocal (pl.reciprocal(..., approx=True)); structural bugs
    # (gate order, packing) would produce errors orders of magnitude larger.
    assert jnp.allclose(out, ref, atol=5e-3, rtol=5e-3), (out, ref)

    print("KERNEL_OK")
</pallas_src>

<mosaic_0001>
module attributes {stable_mosaic.version = 11 : i64} {
  func.func @lstm_mlp_kernel(%arg0: memref<8x8x1xf32, #tpu.memory_space<vmem>>, %arg1: memref<8x32xf32, #tpu.memory_space<vmem>>, %arg2: memref<8x32xf32, #tpu.memory_space<vmem>>, %arg3: memref<1x1x128xf32, #tpu.memory_space<vmem>>, %arg4: memref<32x128xf32, #tpu.memory_space<vmem>>, %arg5: memref<1x1x128xf32, #tpu.memory_space<vmem>>, %arg6: memref<32x128xf32, #tpu.memory_space<vmem>>, %arg7: memref<1x128xf32, #tpu.memory_space<vmem>>, %arg8: memref<1x128xf32, #tpu.memory_space<vmem>>, %arg9: memref<1x1xf32, #tpu.memory_space<vmem>>, %arg10: memref<8x1xf32, #tpu.memory_space<vmem>>) attributes {dimension_semantics = [], scalar_prefetch = 0 : i64, scratch_operands = 0 : i64, tpu.core_type = #tpu.core_type<tc>} {
    %c0 = arith.constant 0 : index
    %c0_0 = arith.constant 0 : index
    %0 = vector.load %arg4[%c0, %c0_0] : memref<32x128xf32, #tpu.memory_space<vmem>>, vector<32x128xf32>
    %c0_1 = arith.constant 0 : index
    %c0_2 = arith.constant 0 : index
    %c0_3 = arith.constant 0 : index
    %1 = vector.load %arg0[%c0_1, %c0_2, %c0_3] : memref<8x8x1xf32, #tpu.memory_space<vmem>>, vector<8x8x1xf32>
    %c0_4 = arith.constant 0 : index
    %c0_5 = arith.constant 0 : index
    %c0_6 = arith.constant 0 : index
    %2 = vector.load %arg3[%c0_4, %c0_5, %c0_6] : memref<1x1x128xf32, #tpu.memory_space<vmem>>, vector<1x1x128xf32>
    %3 = vector.broadcast %1 : vector<8x8x1xf32> to vector<8x8x128xf32>
    %4 = vector.broadcast %2 : vector<1x1x128xf32> to vector<8x8x128xf32>
    %5 = arith.mulf %3, %4 : vector<8x8x128xf32>
    %c0_7 = arith.constant 0 : index
    %c0_8 = arith.constant 0 : index
    %c0_9 = arith.constant 0 : index
    %6 = vector.load %arg5[%c0_7, %c0_8, %c0_9] : memref<1x1x128xf32, #tpu.memory_space<vmem>>, vector<1x1x128xf32>
    %7 = vector.broadcast %6 : vector<1x1x128xf32> to vector<8x8x128xf32>
    %8 = arith.addf %5, %7 : vector<8x8x128xf32>
    %c0_10 = arith.constant 0 : index
    %c0_11 = arith.constant 0 : index
    %9 = vector.load %arg1[%c0_10, %c0_11] : memref<8x32xf32, #tpu.memory_space<vmem>>, vector<8x32xf32>
    %c0_12 = arith.constant 0 : index
    %c0_13 = arith.constant 0 : index
    %10 = vector.load %arg2[%c0_12, %c0_13] : memref<8x32xf32, #tpu.memory_space<vmem>>, vector<8x32xf32>
    %cst = arith.constant dense<0.000000e+00> : vector<8x128xf32>
    %11 = tpu.matmul %9, %0, %cst {dimension_numbers = #tpu.dot_dimension_numbers<[1], [0], [0], [1], [0, 0, 1, 1], [], []>} : vector<8x32xf32>, vector<32x128xf32>, vector<8x128xf32> -> vector<8x128xf32>
    %12 = vector.extract_strided_slice %8 {offsets = [0, 0, 0], sizes = [1, 8, 128], strides = [1, 1, 1]} : vector<8x8x128xf32> to vector<1x8x128xf32>
    %13 = vector.shape_cast %12 : vector<1x8x128xf32> to vector<8x128xf32>
    %14 = arith.addf %11, %13 : vector<8x128xf32>
    %cst_14 = arith.constant 0.000000e+00 : f32
    %15 = vector.broadcast %cst_14 : f32 to vector<8x128xf32>
    %16 = arith.subf %15, %14 : vector<8x128xf32>
    %17 = math.exp %16 : vector<8x128xf32>
    %cst_15 = arith.constant 1.000000e+00 : f32
    %18 = vector.broadcast %cst_15 : f32 to vector<8x128xf32>
    %19 = arith.addf %18, %17 : vector<8x128xf32>
    %20 = tpu.reciprocal %19 {approx = true} : vector<8x128xf32> -> vector<8x128xf32>
    %21 = math.tanh %14 : vector<8x128xf32>
    %22 = vector.extract_strided_slice %20 {offsets = [0, 0], sizes = [8, 32], strides = [1, 1]} : vector<8x128xf32> to vector<8x32xf32>
    %23 = vector.extract_strided_slice %20 {offsets = [0, 32], sizes = [8, 32], strides = [1, 1]} : vector<8x128xf32> to vector<8x32xf32>
    %24 = vector.extract_strided_slice %21 {offsets = [0, 64], sizes = [8, 32], strides = [1, 1]} : vector<8x128xf32> to vector<8x32xf32>
    %25 = vector.extract_strided_slice %20 {offsets = [0, 96], sizes = [8, 32], strides = [1, 1]} : vector<8x128xf32> to vector<8x32xf32>
    %26 = arith.mulf %23, %10 : vector<8x32xf32>
    %27 = arith.mulf %22, %24 : vector<8x32xf32>
    %28 = arith.addf %26, %27 : vector<8x32xf32>
    %29 = math.tanh %28 : vector<8x32xf32>
    %30 = arith.mulf %25, %29 : vector<8x32xf32>
    %cst_16 = arith.constant dense<0.000000e+00> : vector<8x128xf32>
    %31 = tpu.matmul %30, %0, %cst_16 {dimension_numbers = #tpu.dot_dimension_numbers<[1], [0], [0], [1], [0, 0, 1, 1], [], []>} : vector<8x32xf32>, vector<32x128xf32>, vector<8x128xf32> -> vector<8x128xf32>
    %32 = vector.extract_strided_slice %8 {offsets = [1, 0, 0], sizes = [1, 8, 128], strides = [1, 1, 1]} : vector<8x8x128xf32> to vector<1x8x128xf32>
    %33 = vector.shape_cast %32 : vector<1x8x128xf32> to vector<8x128xf32>
    %34 = arith.addf %31, %33 : vector<8x128xf32>
    %cst_17 = arith.constant 0.000000e+00 : f32
    %35 = vector.broadcast %cst_17 : f32 to vector<8x128xf32>
    %36 = arith.subf %35, %34 : vector<8x128xf32>
    %37 = math.exp %36 : vector<8x128xf32>
    %cst_18 = arith.constant 1.000000e+00 : f32
    %38 = vector.broadcast %cst_18 : f32 to vector<8x128xf32>
    %39 = arith.addf %38, %37 : vector<8x128xf32>
    %40 = tpu.reciprocal %39 {approx = true} : vector<8x128xf32> -> vector<8x128xf32>
    %41 = math.tanh %34 : vector<8x128xf32>
    %42 = vector.extract_strided_slice %40 {offsets = [0, 0], sizes = [8, 32], strides = [1, 1]} : vector<8x128xf32> to vector<8x32xf32>
    %43 = vector.extract_strided_slice %40 {offsets = [0, 32], sizes = [8, 32], strides = [1, 1]} : vector<8x128xf32> to vector<8x32xf32>
    %44 = vector.extract_strided_slice %41 {offsets = [0, 64], sizes = [8, 32], strides = [1, 1]} : vector<8x128xf32> to vector<8x32xf32>
    %45 = vector.extract_strided_slice %40 {offsets = [0, 96], sizes = [8, 32], strides = [1, 1]} : vector<8x128xf32> to vector<8x32xf32>
    %46 = arith.mulf %43, %28 : vector<8x32xf32>
    %47 = arith.mulf %42, %44 : vector<8x32xf32>
    %48 = arith.addf %46, %47 : vector<8x32xf32>
    %49 = math.tanh %48 : vector<8x32xf32>
    %50 = arith.mulf %45, %49 : vector<8x32xf32>
    %cst_19 = arith.constant dense<0.000000e+00> : vector<8x128xf32>
    %51 = tpu.matmul %50, %0, %cst_19 {dimension_numbers = #tpu.dot_dimension_numbers<[1], [0], [0], [1], [0, 0, 1, 1], [], []>} : vector<8x32xf32>, vector<32x128xf32>, vector<8x128xf32> -> vector<8x128xf32>
    %52 = vector.extract_strided_slice %8 {offsets = [2, 0, 0], sizes = [1, 8, 128], strides = [1, 1, 1]} : vector<8x8x128xf32> to vector<1x8x128xf32>
    %53 = vector.shape_cast %52 : vector<1x8x128xf32> to vector<8x128xf32>
    %54 = arith.addf %51, %53 : vector<8x128xf32>
    %cst_20 = arith.constant 0.000000e+00 : f32
    %55 = vector.broadcast %cst_20 : f32 to vector<8x128xf32>
    %56 = arith.subf %55, %54 : vector<8x128xf32>
    %57 = math.exp %56 : vector<8x128xf32>
    %cst_21 = arith.constant 1.000000e+00 : f32
    %58 = vector.broadcast %cst_21 : f32 to vector<8x128xf32>
    %59 = arith.addf %58, %57 : vector<8x128xf32>
    %60 = tpu.reciprocal %59 {approx = true} : vector<8x128xf32> -> vector<8x128xf32>
    %61 = math.tanh %54 : vector<8x128xf32>
    %62 = vector.extract_strided_slice %60 {offsets = [0, 0], sizes = [8, 32], strides = [1, 1]} : vector<8x128xf32> to vector<8x32xf32>
    %63 = vector.extract_strided_slice %60 {offsets = [0, 32], sizes = [8, 32], strides = [1, 1]} : vector<8x128xf32> to vector<8x32xf32>
    %64 = vector.extract_strided_slice %61 {offsets = [0, 64], sizes = [8, 32], strides = [1, 1]} : vector<8x128xf32> to vector<8x32xf32>
    %65 = vector.extract_strided_slice %60 {offsets = [0, 96], sizes = [8, 32], strides = [1, 1]} : vector<8x128xf32> to vector<8x32xf32>
    %66 = arith.mulf %63, %48 : vector<8x32xf32>
    %67 = arith.mulf %62, %64 : vector<8x32xf32>
    %68 = arith.addf %66, %67 : vector<8x32xf32>
    %69 = math.tanh %68 : vector<8x32xf32>
    %70 = arith.mulf %65, %69 : vector<8x32xf32>
    %cst_22 = arith.constant dense<0.000000e+00> : vector<8x128xf32>
    %71 = tpu.matmul %70, %0, %cst_22 {dimension_numbers = #tpu.dot_dimension_numbers<[1], [0], [0], [1], [0, 0, 1, 1], [], []>} : vector<8x32xf32>, vector<32x128xf32>, vector<8x128xf32> -> vector<8x128xf32>
    %72 = vector.extract_strided_slice %8 {offsets = [3, 0, 0], sizes = [1, 8, 128], strides = [1, 1, 1]} : vector<8x8x128xf32> to vector<1x8x128xf32>
    %73 = vector.shape_cast %72 : vector<1x8x128xf32> to vector<8x128xf32>
    %74 = arith.addf %71, %73 : vector<8x128xf32>
    %cst_23 = arith.constant 0.000000e+00 : f32
    %75 = vector.broadcast %cst_23 : f32 to vector<8x128xf32>
    %76 = arith.subf %75, %74 : vector<8x128xf32>
    %77 = math.exp %76 : vector<8x128xf32>
    %cst_24 = arith.constant 1.000000e+00 : f32
    %78 = vector.broadcast %cst_24 : f32 to vector<8x128xf32>
    %79 = arith.addf %78, %77 : vector<8x128xf32>
    %80 = tpu.reciprocal %79 {approx = true} : vector<8x128xf32> -> vector<8x128xf32>
    %81 = math.tanh %74 : vector<8x128xf32>
    %82 = vector.extract_strided_slice %80 {offsets = [0, 0], sizes = [8, 32], strides = [1, 1]} : vector<8x128xf32> to vector<8x32xf32>
    %83 = vector.extract_strided_slice %80 {offsets = [0, 32], sizes = [8, 32], strides = [1, 1]} : vector<8x128xf32> to vector<8x32xf32>
    %84 = vector.extract_strided_slice %81 {offsets = [0, 64], sizes = [8, 32], strides = [1, 1]} : vector<8x128xf32> to vector<8x32xf32>
    %85 = vector.extract_strided_slice %80 {offsets = [0, 96], sizes = [8, 32], strides = [1, 1]} : vector<8x128xf32> to vector<8x32xf32>
    %86 = arith.mulf %83, %68 : vector<8x32xf32>
    %87 = arith.mulf %82, %84 : vector<8x32xf32>
    %88 = arith.addf %86, %87 : vector<8x32xf32>
    %89 = math.tanh %88 : vector<8x32xf32>
    %90 = arith.mulf %85, %89 : vector<8x32xf32>
    %cst_25 = arith.constant dense<0.000000e+00> : vector<8x128xf32>
    %91 = tpu.matmul %90, %0, %cst_25 {dimension_numbers = #tpu.dot_dimension_numbers<[1], [0], [0], [1], [0, 0, 1, 1], [], []>} : vector<8x32xf32>, vector<32x128xf32>, vector<8x128xf32> -> vector<8x128xf32>
    %92 = vector.extract_strided_slice %8 {offsets = [4, 0, 0], sizes = [1, 8, 128], strides = [1, 1, 1]} : vector<8x8x128xf32> to vector<1x8x128xf32>
    %93 = vector.shape_cast %92 : vector<1x8x128xf32> to vector<8x128xf32>
    %94 = arith.addf %91, %93 : vector<8x128xf32>
    %cst_26 = arith.constant 0.000000e+00 : f32
    %95 = vector.broadcast %cst_26 : f32 to vector<8x128xf32>
    %96 = arith.subf %95, %94 : vector<8x128xf32>
    %97 = math.exp %96 : vector<8x128xf32>
    %cst_27 = arith.constant 1.000000e+00 : f32
    %98 = vector.broadcast %cst_27 : f32 to vector<8x128xf32>
    %99 = arith.addf %98, %97 : vector<8x128xf32>
    %100 = tpu.reciprocal %99 {approx = true} : vector<8x128xf32> -> vector<8x128xf32>
    %101 = math.tanh %94 : vector<8x128xf32>
    %102 = vector.extract_strided_slice %100 {offsets = [0, 0], sizes = [8, 32], strides = [1, 1]} : vector<8x128xf32> to vector<8x32xf32>
    %103 = vector.extract_strided_slice %100 {offsets = [0, 32], sizes = [8, 32], strides = [1, 1]} : vector<8x128xf32> to vector<8x32xf32>
    %104 = vector.extract_strided_slice %101 {offsets = [0, 64], sizes = [8, 32], strides = [1, 1]} : vector<8x128xf32> to vector<8x32xf32>
    %105 = vector.extract_strided_slice %100 {offsets = [0, 96], sizes = [8, 32], strides = [1, 1]} : vector<8x128xf32> to vector<8x32xf32>
    %106 = arith.mulf %103, %88 : vector<8x32xf32>
    %107 = arith.mulf %102, %104 : vector<8x32xf32>
    %108 = arith.addf %106, %107 : vector<8x32xf32>
    %109 = math.tanh %108 : vector<8x32xf32>
    %110 = arith.mulf %105, %109 : vector<8x32xf32>
    %cst_28 = arith.constant dense<0.000000e+00> : vector<8x128xf32>
    %111 = tpu.matmul %110, %0, %cst_28 {dimension_numbers = #tpu.dot_dimension_numbers<[1], [0], [0], [1], [0, 0, 1, 1], [], []>} : vector<8x32xf32>, vector<32x128xf32>, vector<8x128xf32> -> vector<8x128xf32>
    %112 = vector.extract_strided_slice %8 {offsets = [5, 0, 0], sizes = [1, 8, 128], strides = [1, 1, 1]} : vector<8x8x128xf32> to vector<1x8x128xf32>
    %113 = vector.shape_cast %112 : vector<1x8x128xf32> to vector<8x128xf32>
    %114 = arith.addf %111, %113 : vector<8x128xf32>
    %cst_29 = arith.constant 0.000000e+00 : f32
    %115 = vector.broadcast %cst_29 : f32 to vector<8x128xf32>
    %116 = arith.subf %115, %114 : vector<8x128xf32>
    %117 = math.exp %116 : vector<8x128xf32>
    %cst_30 = arith.constant 1.000000e+00 : f32
    %118 = vector.broadcast %cst_30 : f32 to vector<8x128xf32>
    %119 = arith.addf %118, %117 : vector<8x128xf32>
    %120 = tpu.reciprocal %119 {approx = true} : vector<8x128xf32> -> vector<8x128xf32>
    %121 = math.tanh %114 : vector<8x128xf32>
    %122 = vector.extract_strided_slice %120 {offsets = [0, 0], sizes = [8, 32], strides = [1, 1]} : vector<8x128xf32> to vector<8x32xf32>
    %123 = vector.extract_strided_slice %120 {offsets = [0, 32], sizes = [8, 32], strides = [1, 1]} : vector<8x128xf32> to vector<8x32xf32>
    %124 = vector.extract_strided_slice %121 {offsets = [0, 64], sizes = [8, 32], strides = [1, 1]} : vector<8x128xf32> to vector<8x32xf32>
    %125 = vector.extract_strided_slice %120 {offsets = [0, 96], sizes = [8, 32], strides = [1, 1]} : vector<8x128xf32> to vector<8x32xf32>
    %126 = arith.mulf %123, %108 : vector<8x32xf32>
    %127 = arith.mulf %122, %124 : vector<8x32xf32>
    %128 = arith.addf %126, %127 : vector<8x32xf32>
    %129 = math.tanh %128 : vector<8x32xf32>
    %130 = arith.mulf %125, %129 : vector<8x32xf32>
    %cst_31 = arith.constant dense<0.000000e+00> : vector<8x128xf32>
    %131 = tpu.matmul %130, %0, %cst_31 {dimension_numbers = #tpu.dot_dimension_numbers<[1], [0], [0], [1], [0, 0, 1, 1], [], []>} : vector<8x32xf32>, vector<32x128xf32>, vector<8x128xf32> -> vector<8x128xf32>
    %132 = vector.extract_strided_slice %8 {offsets = [6, 0, 0], sizes = [1, 8, 128], strides = [1, 1, 1]} : vector<8x8x128xf32> to vector<1x8x128xf32>
    %133 = vector.shape_cast %132 : vector<1x8x128xf32> to vector<8x128xf32>
    %134 = arith.addf %131, %133 : vector<8x128xf32>
    %cst_32 = arith.constant 0.000000e+00 : f32
    %135 = vector.broadcast %cst_32 : f32 to vector<8x128xf32>
    %136 = arith.subf %135, %134 : vector<8x128xf32>
    %137 = math.exp %136 : vector<8x128xf32>
    %cst_33 = arith.constant 1.000000e+00 : f32
    %138 = vector.broadcast %cst_33 : f32 to vector<8x128xf32>
    %139 = arith.addf %138, %137 : vector<8x128xf32>
    %140 = tpu.reciprocal %139 {approx = true} : vector<8x128xf32> -> vector<8x128xf32>
    %141 = math.tanh %134 : vector<8x128xf32>
    %142 = vector.extract_strided_slice %140 {offsets = [0, 0], sizes = [8, 32], strides = [1, 1]} : vector<8x128xf32> to vector<8x32xf32>
    %143 = vector.extract_strided_slice %140 {offsets = [0, 32], sizes = [8, 32], strides = [1, 1]} : vector<8x128xf32> to vector<8x32xf32>
    %144 = vector.extract_strided_slice %141 {offsets = [0, 64], sizes = [8, 32], strides = [1, 1]} : vector<8x128xf32> to vector<8x32xf32>
    %145 = vector.extract_strided_slice %140 {offsets = [0, 96], sizes = [8, 32], strides = [1, 1]} : vector<8x128xf32> to vector<8x32xf32>
    %146 = arith.mulf %143, %128 : vector<8x32xf32>
    %147 = arith.mulf %142, %144 : vector<8x32xf32>
    %148 = arith.addf %146, %147 : vector<8x32xf32>
    %149 = math.tanh %148 : vector<8x32xf32>
    %150 = arith.mulf %145, %149 : vector<8x32xf32>
    %cst_34 = arith.constant dense<0.000000e+00> : vector<8x128xf32>
    %151 = tpu.matmul %150, %0, %cst_34 {dimension_numbers = #tpu.dot_dimension_numbers<[1], [0], [0], [1], [0, 0, 1, 1], [], []>} : vector<8x32xf32>, vector<32x128xf32>, vector<8x128xf32> -> vector<8x128xf32>
    %152 = vector.extract_strided_slice %8 {offsets = [7, 0, 0], sizes = [1, 8, 128], strides = [1, 1, 1]} : vector<8x8x128xf32> to vector<1x8x128xf32>
    %153 = vector.shape_cast %152 : vector<1x8x128xf32> to vector<8x128xf32>
    %154 = arith.addf %151, %153 : vector<8x128xf32>
    %cst_35 = arith.constant 0.000000e+00 : f32
    %155 = vector.broadcast %cst_35 : f32 to vector<8x128xf32>
    %156 = arith.subf %155, %154 : vector<8x128xf32>
    %157 = math.exp %156 : vector<8x128xf32>
    %cst_36 = arith.constant 1.000000e+00 : f32
    %158 = vector.broadcast %cst_36 : f32 to vector<8x128xf32>
    %159 = arith.addf %158, %157 : vector<8x128xf32>
    %160 = tpu.reciprocal %159 {approx = true} : vector<8x128xf32> -> vector<8x128xf32>
    %161 = math.tanh %154 : vector<8x128xf32>
    %162 = vector.extract_strided_slice %160 {offsets = [0, 0], sizes = [8, 32], strides = [1, 1]} : vector<8x128xf32> to vector<8x32xf32>
    %163 = vector.extract_strided_slice %160 {offsets = [0, 32], sizes = [8, 32], strides = [1, 1]} : vector<8x128xf32> to vector<8x32xf32>
    %164 = vector.extract_strided_slice %161 {offsets = [0, 64], sizes = [8, 32], strides = [1, 1]} : vector<8x128xf32> to vector<8x32xf32>
    %165 = vector.extract_strided_slice %160 {offsets = [0, 96], sizes = [8, 32], strides = [1, 1]} : vector<8x128xf32> to vector<8x32xf32>
    %166 = arith.mulf %163, %148 : vector<8x32xf32>
    %167 = arith.mulf %162, %164 : vector<8x32xf32>
    %168 = arith.addf %166, %167 : vector<8x32xf32>
    %169 = math.tanh %168 : vector<8x32xf32>
    %170 = arith.mulf %165, %169 : vector<8x32xf32>
    %c0_37 = arith.constant 0 : index
    %c0_38 = arith.constant 0 : index
    %171 = vector.load %arg6[%c0_37, %c0_38] : memref<32x128xf32, #tpu.memory_space<vmem>>, vector<32x128xf32>
    %cst_39 = arith.constant dense<0.000000e+00> : vector<8x128xf32>
    %172 = tpu.matmul %170, %171, %cst_39 {dimension_numbers = #tpu.dot_dimension_numbers<[1], [0], [0], [1], [0, 0, 1, 1], [], []>} : vector<8x32xf32>, vector<32x128xf32>, vector<8x128xf32> -> vector<8x128xf32>
    %c0_40 = arith.constant 0 : index
    %c0_41 = arith.constant 0 : index
    %173 = vector.load %arg7[%c0_40, %c0_41] : memref<1x128xf32, #tpu.memory_space<vmem>>, vector<1x128xf32>
    %174 = vector.broadcast %173 : vector<1x128xf32> to vector<8x128xf32>
    %175 = arith.addf %172, %174 : vector<8x128xf32>
    %cst_42 = arith.constant 0.000000e+00 : f32
    %176 = vector.broadcast %cst_42 : f32 to vector<8x128xf32>
    %177 = arith.maximumf %175, %176 : vector<8x128xf32>
    %c0_43 = arith.constant 0 : index
    %c0_44 = arith.constant 0 : index
    %178 = vector.load %arg8[%c0_43, %c0_44] : memref<1x128xf32, #tpu.memory_space<vmem>>, vector<1x128xf32>
    %179 = vector.broadcast %178 : vector<1x128xf32> to vector<8x128xf32>
    %180 = arith.mulf %177, %179 : vector<8x128xf32>
    %cst_45 = arith.constant dense<0.000000e+00> : vector<8xf32>
    %181 = vector.multi_reduction <add>, %180, %cst_45 [1] : vector<8x128xf32> to vector<8xf32>
    %182 = vector.shape_cast %181 : vector<8xf32> to vector<8x1xf32>
    %c0_46 = arith.constant 0 : index
    %c0_47 = arith.constant 0 : index
    %183 = vector.load %arg9[%c0_46, %c0_47] : memref<1x1xf32, #tpu.memory_space<vmem>>, vector<1x1xf32>
    %184 = vector.broadcast %183 : vector<1x1xf32> to vector<8x1xf32>
    %185 = arith.addf %182, %184 : vector<8x1xf32>
    %cst_48 = arith.constant 0.000000e+00 : f32
    %186 = vector.broadcast %cst_48 : f32 to vector<8x1xf32>
    %187 = arith.maximumf %185, %186 : vector<8x1xf32>
    %c0_49 = arith.constant 0 : index
    %c0_50 = arith.constant 0 : index
    %188 = vector.load %arg10[%c0_49, %c0_50] : memref<8x1xf32, #tpu.memory_space<vmem>>, vector<8x1xf32>
    tpu.vector_store %arg10[%c0_49, %c0_50], %187 {strides = array<i32>} : memref<8x1xf32, #tpu.memory_space<vmem>>, vector<8x1xf32>,
    return
  }
}

</mosaic_0001>

<bundles_post_ra>
// kernel: rnn_forward.1
= control target key start
LH: loop header
LB: loop body
LE: loop exit
PB: predicated region body
PF: predicated region fallthrough
CT: control target
= control target key end

     0   :  { %v639_v2 = vmov 0   ;;  %s640_s23 = smov 32   ;;  %vm115_vm0 = vcmask 261120   ;;  %s641_s29 = smov 64   ;;  %vm549_vm1 = vcmask 7168   ;;  %s831_s4 = inlined_call_operand.vmem [shape: f32[32,128], index: 4, kind: input, shape index: {}]   ;;  %s832_s0 = inlined_call_operand.vmem [shape: f32[8,8,1], index: 0, kind: input, shape index: {}]   ;;  %s833_s2 = inlined_call_operand.vmem [shape: f32[8,32], index: 2, kind: input, shape index: {}]   ;;  %s834_s3 = inlined_call_operand.vmem [shape: f32[1,1,128], index: 3, kind: input, shape index: {}]   ;;  %s835_s1 = inlined_call_operand.vmem [shape: f32[8,32], index: 1, kind: input, shape index: {}]   ;;  %s836_s5 = inlined_call_operand.vmem [shape: f32[1,1,128], index: 5, kind: input, shape index: {}]   ;;  %s837_s6 = inlined_call_operand.vmem [shape: f32[32,128], index: 6, kind: input, shape index: {}]   ;;  %s838_s7 = inlined_call_operand.vmem [shape: f32[1,128], index: 7, kind: input, shape index: {}]   ;;  %s839_s8 = inlined_call_operand.vmem [shape: f32[1,128], index: 8, kind: input, shape index: {}]   ;;  %s840_s9 = inlined_call_operand.<no memory space> [shape: f32[1,1], index: 9, kind: input, shape index: {}]   ;;  %s841_s10 = inlined_call_operand.vmem [shape: f32[8,1], index: 10, kind: output, shape index: {}]  }
   0x1   :  { %v40_v0 = vld [vmem:[%s831_s4 + $0x18] sm:$0xff]  ;;  %v39_v1 = vld [vmem:[%s831_s4 + $0x10] sm:$0xff]  ;;  %567 = vset.pattern.permute.xlu0 %v639_v2  ;;  %568 = vset.pattern.permute.xlu2 %v639_v2  ;;  %v41_v3 = vld [vmem:[%s832_s0] sm:$0xff] }
   0x2   :  { %131 = vmatpush.msra.mxu0 %v40_v0  ;;  %183 = vmatpush.msra.mxu1 %v40_v0  ;;  %v38_v4 = vld [vmem:[%s831_s4 + $0x8] sm:$0xff]  ;;  %v114_v5 = vld [vmem:[%s833_s2] sm:$0xff]  ;;  %v43_v51 = vld [vmem:[%s832_s0 + $0x10] sm:$0xff] }
   0x3   :  { %52 = vperm.xlu0 %567, %v41_v3   ;;  %231 = vmatpush.msra.mxu2 %v40_v0  ;;  %v37_v6 = vld [vmem:[%s831_s4] sm:$0xff]  ;;  %v42_v16 = vld [vmem:[%s832_s0 + $0x8] sm:$0xff] }
   0x4   :  { %132 = vmatpush.msra.mxu0 %v39_v1  ;;  %146 = vrot.lane.b32.xlu1 %v114_v5, %s640_s23  ;;  %v113_v7 = vld [vmem:[%s835_s1] sm:$0xff] }
   0x5   :  { %184 = vmatpush.msra.mxu1 %v39_v1  ;;  %232 = vmatpush.msra.mxu2 %v39_v1  ;;  %v723_v8 = vld [vmem:[%s834_s3] ss:$0 sm:$0xff] }
   0x6   :  { %133 = vmatpush.msra.mxu0 %v38_v4  ;;  %279 = vmatpush.msra.mxu3 %v40_v0  ;;  %v729_v11 = vld [vmem:[%s836_s5] ss:$0 sm:$0xff] }
   0x7   :  { %185 = vmatpush.msra.mxu1 %v38_v4  ;;  %233 = vmatpush.msra.mxu2 %v38_v4 }
   0x8   :  { %134 = vmatpush.msra.mxu0 %v37_v6  ;;  %280 = vmatpush.msra.mxu3 %v39_v1 }
   0x9   :  { %555 = vmatmul.msk.f32.vlgmr.msra.gmra.mxu0 %vm115_vm0, %v113_v7  ;;  %186 = vmatpush.msra.mxu1 %v37_v6 }
   0xa   :  { %234 = vmatpush.msra.mxu2 %v37_v6  ;;  %281 = vmatpush.msra.mxu3 %v38_v4 }
   0xb   :  { %569 = vset.pattern.permute.xlu1 %v639_v2  ;;  %327 = vmatpush.msrb.mxu0 %v40_v0 }
   0xc   :  { %282 = vmatpush.msra.mxu3 %v37_v6  ;;  %375 = vmatpush.msrb.mxu1 %v40_v0 }
   0xd   :  { %328 = vmatpush.msrb.mxu0 %v39_v1  ;;  %423 = vmatpush.msrb.mxu2 %v40_v0 }
   0xe   :  { %376 = vmatpush.msrb.mxu1 %v39_v1  ;;  %471 = vmatpush.msrb.mxu3 %v40_v0 }
   0xf   :  { %329 = vmatpush.msrb.mxu0 %v38_v4  ;;  %424 = vmatpush.msrb.mxu2 %v39_v1 }
  0x10   :  { %377 = vmatpush.msrb.mxu1 %v38_v4  ;;  %472 = vmatpush.msrb.mxu3 %v39_v1 }
  0x11   :  { %330 = vmatpush.msrb.mxu0 %v37_v6  ;;  %425 = vmatpush.msrb.mxu2 %v38_v4 }
  0x12   :  { %378 = vmatpush.msrb.mxu1 %v37_v6  ;;  %473 = vmatpush.msrb.mxu3 %v38_v4 }
  0x13   :  { %426 = vmatpush.msrb.mxu2 %v37_v6 }
  0x14   :  { %474 = vmatpush.msrb.mxu3 %v37_v6 }
  0x75   :  { %v53_v9 = vpop.permute.xlu0 %52 }
  0x76   :  { %v93_v10 = vmul.f32 %v723_v8, %v53_v9  ;;  %v147_v24 = vpop.permute.xlu1 %146  ;;  %v44_v9 = vld [vmem:[%s832_s0 + $0x18] sm:$0xff] }
  0x78   :  { %v105_v12 = vadd.f32 %v729_v11, %v93_v10 }
  0x86   :  { %v136_v13 = vpop.f32.mrf.mxu0 }
  0x87   :  { %v137_v14 = vadd.f32 %v136_v13, %v105_v12 }
  0x89   :  { %575 = vtanh.f32 %v137_v14  ;;  %v139_v17 = vsub.f32 0.0, %v137_v14 }
  0x8b   :  { %v140_v18 = vmul.f32 1.442695, %v139_v17 }
  0x8d   :  { %577 = vpow2.f32 %v140_v18 }
  0x8f   :  { %v576_v15 = vpop.eup %575 }
  0x90   :  { %151 = vrot.lane.b32.xlu0 %v576_v15, %s641_s29 }
  0x93   :  { %v578_v19 = vpop.eup %577 }
  0x94   :  { %v142_v20 = vadd.f32 1.0, %v578_v19 }
  0x96   :  { %579 = vrcp.f32 %v142_v20 }
  0x98   :  { %57 = vperm.xlu0 %567, %v42_v16  }
  0x9c   :  { %v580_v21 = vpop.eup %579 }
  0x9d   :  { %v149_v25 = vmul.f32 %v580_v21, %v147_v24 }
 0x102   :  { %v152_v22 = vpop.permute.xlu0 %151 }
 0x103   :  { %v154_v23 = vmul.f32 %v580_v21, %v152_v22 }
 0x105   :  { %156 = vrot.lane.b32.xlu1 %v154_v23, %s640_s23 }
 0x10a   :  { %v58_v32 = vpop.permute.xlu0 %57 }
 0x10b   :  { %v94_v33 = vmul.f32 %v723_v8, %v58_v32 }
 0x10d   :  { %v106_v34 = vadd.f32 %v729_v11, %v94_v33 }
 0x177   :  { %v157_v26 = vpop.permute.xlu1 %156 }
 0x178   :  { %v159_v27 = vadd.f32 %v157_v26, %v149_v25  ;;  %v45_v25 = vld [vmem:[%s832_s0 + $0x20] sm:$0xff] }
 0x17a   :  { %581 = vtanh.f32 %v159_v27 }
 0x180   :  { %v582_v28 = vpop.eup %581 }
 0x181   :  { %162 = vrot.lane.b32.xlu2 %v582_v28, %s641_s29 }
 0x1db   :  { %v163_v29 = vpop.permute.xlu2 %162 }
 0x1dc   :  { %v165_v30 = vmul.f32 %v580_v21, %v163_v29 }
 0x1de   :  { %167 = vrot.lane.b32.xlu2 %v165_v30, %s640_s23 }
 0x238   :  { %v168_v31 = vpop.permute.xlu2 %167 }
 0x239   :  { %556 = vmatmul.msk.f32.vlgmr.msra.gmra.mxu1 %vm115_vm0, %v168_v31 }
 0x2b6   :  { %v188_v35 = vpop.f32.mrf.mxu1 }
 0x2b7   :  { %v189_v36 = vadd.f32 %v188_v35, %v106_v34 }
 0x2b9   :  { %583 = vtanh.f32 %v189_v36  ;;  %v191_v38 = vsub.f32 0.0, %v189_v36 }
 0x2bb   :  { %v192_v39 = vmul.f32 1.442695, %v191_v38 }
 0x2bd   :  { %585 = vpow2.f32 %v192_v39 }
 0x2bf   :  { %v584_v37 = vpop.eup %583 }
 0x2c0   :  { %199 = vrot.lane.b32.xlu1 %v584_v37, %s641_s29 }
 0x2c3   :  { %v586_v40 = vpop.eup %585 }
 0x2c4   :  { %v194_v41 = vadd.f32 1.0, %v586_v40 }
 0x2c6   :  { %587 = vrcp.f32 %v194_v41 }
 0x2cc   :  { %v588_v42 = vpop.eup %587 }
 0x2cd   :  { %v197_v45 = vmul.f32 %v588_v42, %v159_v27 }
 0x332   :  { %v200_v43 = vpop.permute.xlu1 %199 }
 0x333   :  { %v202_v44 = vmul.f32 %v588_v42, %v200_v43 }
 0x335   :  { %204 = vrot.lane.b32.xlu2 %v202_v44, %s640_s23 }
 0x33d   :  { %62 = vperm.xlu2 %568, %v43_v51  }
 0x38f   :  { %v205_v46 = vpop.permute.xlu2 %204 }
 0x390   :  { %v207_v47 = vadd.f32 %v205_v46, %v197_v45  ;;  %v46_v46 = vld [vmem:[%s832_s0 + $0x28] sm:$0xff] }
 0x392   :  { %589 = vtanh.f32 %v207_v47 }
 0x397   :  { %v63_v53 = vpop.permute.xlu2 %62 }
 0x398   :  { %v590_v48 = vpop.eup %589  ;;  %v95_v54 = vmul.f32 %v723_v8, %v63_v53 }
 0x399   :  { %210 = vrot.lane.b32.xlu0 %v590_v48, %s641_s29 }
 0x39a   :  { %v107_v55 = vadd.f32 %v729_v11, %v95_v54 }
 0x40b   :  { %v211_v49 = vpop.permute.xlu0 %210 }
 0x40c   :  { %v213_v50 = vmul.f32 %v588_v42, %v211_v49 }
 0x40e   :  { %215 = vrot.lane.b32.xlu1 %v213_v50, %s640_s23 }
 0x480   :  { %v216_v52 = vpop.permute.xlu1 %215 }
 0x481   :  { %557 = vmatmul.msk.f32.vlgmr.msra.gmra.mxu2 %vm115_vm0, %v216_v52 }
 0x504   :  { %v236_v56 = vpop.f32.mrf.mxu2 }
 0x505   :  { %v237_v57 = vadd.f32 %v236_v56, %v107_v55 }
 0x507   :  { %591 = vtanh.f32 %v237_v57  ;;  %v239_v59 = vsub.f32 0.0, %v237_v57 }
 0x509   :  { %v240_v60 = vmul.f32 1.442695, %v239_v59 }
 0x50b   :  { %593 = vpow2.f32 %v240_v60 }
 0x50d   :  { %v592_v58 = vpop.eup %591 }
 0x50e   :  { %247 = vrot.lane.b32.xlu0 %v592_v58, %s641_s29 }
 0x511   :  { %v594_v61 = vpop.eup %593 }
 0x512   :  { %v242_v62 = vadd.f32 1.0, %v594_v61 }
 0x514   :  { %595 = vrcp.f32 %v242_v62 }
 0x51a   :  { %v596_v63 = vpop.eup %595 }
 0x51b   :  { %v245_v2 = vmul.f32 %v596_v63, %v207_v47 }
 0x580   :  { %v248_v0 = vpop.permute.xlu0 %247 }
 0x581   :  { %v250_v1 = vmul.f32 %v596_v63, %v248_v0 }
 0x583   :  { %252 = vrot.lane.b32.xlu1 %v250_v1, %s640_s23 }
 0x58b   :  { %67 = vperm.xlu1 %569, %v44_v9  }
 0x5f5   :  { %v253_v3 = vpop.permute.xlu1 %252 }
 0x5f6   :  { %v255_v4 = vadd.f32 %v253_v3, %v245_v2  ;;  %v47_v3 = vld [vmem:[%s832_s0 + $0x30] sm:$0xff] }
 0x5f8   :  { %597 = vtanh.f32 %v255_v4 }
 0x5fd   :  { %v68_v12 = vpop.permute.xlu1 %67 }
 0x5fe   :  { %v598_v5 = vpop.eup %597  ;;  %v96_v13 = vmul.f32 %v723_v8, %v68_v12 }
 0x5ff   :  { %258 = vrot.lane.b32.xlu2 %v598_v5, %s641_s29 }
 0x600   :  { %v108_v14 = vadd.f32 %v729_v11, %v96_v13 }
 0x659   :  { %v259_v6 = vpop.permute.xlu2 %258 }
 0x65a   :  { %v261_v7 = vmul.f32 %v596_v63, %v259_v6 }
 0x65c   :  { %263 = vrot.lane.b32.xlu0 %v261_v7, %s640_s23 }
 0x6ce   :  { %v264_v10 = vpop.permute.xlu0 %263 }
 0x6cf   :  { %558 = vmatmul.msk.f32.vlgmr.msra.gmra.mxu3 %vm115_vm0, %v264_v10 }
 0x752   :  { %v284_v15 = vpop.f32.mrf.mxu3 }
 0x753   :  { %v285_v16 = vadd.f32 %v284_v15, %v108_v14 }
 0x755   :  { %599 = vtanh.f32 %v285_v16  ;;  %v287_v18 = vsub.f32 0.0, %v285_v16 }
 0x757   :  { %v288_v19 = vmul.f32 1.442695, %v287_v18 }
 0x759   :  { %601 = vpow2.f32 %v288_v19 }
 0x75b   :  { %v600_v17 = vpop.eup %599 }
 0x75c   :  { %295 = vrot.lane.b32.xlu2 %v600_v17, %s641_s29 }
 0x75f   :  { %v602_v20 = vpop.eup %601 }
 0x760   :  { %v290_v21 = vadd.f32 1.0, %v602_v20 }
 0x762   :  { %603 = vrcp.f32 %v290_v21 }
 0x768   :  { %v604_v22 = vpop.eup %603 }
 0x769   :  { %v293_v26 = vmul.f32 %v604_v22, %v255_v4 }
 0x7b6   :  { %v296_v23 = vpop.permute.xlu2 %295 }
 0x7b7   :  { %v298_v24 = vmul.f32 %v604_v22, %v296_v23 }
 0x7b9   :  { %300 = vrot.lane.b32.xlu0 %v298_v24, %s640_s23 }
 0x7c1   :  { %72 = vperm.xlu0 %567, %v45_v25  }
 0x82b   :  { %v301_v27 = vpop.permute.xlu0 %300 }
 0x82c   :  { %v303_v28 = vadd.f32 %v301_v27, %v293_v26  ;;  %v48_v26 = vld [vmem:[%s832_s0 + $0x38] sm:$0xff] }
 0x82e   :  { %605 = vtanh.f32 %v303_v28 }
 0x833   :  { %v73_v33 = vpop.permute.xlu0 %72 }
 0x834   :  { %v606_v29 = vpop.eup %605  ;;  %v97_v34 = vmul.f32 %v723_v8, %v73_v33 }
 0x835   :  { %306 = vrot.lane.b32.xlu1 %v606_v29, %s641_s29 }
 0x836   :  { %v109_v35 = vadd.f32 %v729_v11, %v97_v34 }
 0x8a7   :  { %v307_v30 = vpop.permute.xlu1 %306 }
 0x8a8   :  { %v309_v31 = vmul.f32 %v604_v22, %v307_v30 }
 0x8aa   :  { %311 = vrot.lane.b32.xlu2 %v309_v31, %s640_s23 }
 0x904   :  { %v312_v32 = vpop.permute.xlu2 %311 }
 0x905   :  { %559 = vmatmul.msk.f32.vlgmr.msrb.gmra.mxu0 %vm115_vm0, %v312_v32 }
 0x982   :  { %v332_v36 = vpop.f32.mrf.mxu0 }
 0x983   :  { %v333_v37 = vadd.f32 %v332_v36, %v109_v35 }
 0x985   :  { %607 = vtanh.f32 %v333_v37  ;;  %v335_v39 = vsub.f32 0.0, %v333_v37 }
 0x987   :  { %v336_v40 = vmul.f32 1.442695, %v335_v39 }
 0x989   :  { %609 = vpow2.f32 %v336_v40 }
 0x98b   :  { %v608_v38 = vpop.eup %607 }
 0x98c   :  { %343 = vrot.lane.b32.xlu1 %v608_v38, %s641_s29 }
 0x98f   :  { %v610_v41 = vpop.eup %609 }
 0x990   :  { %v338_v42 = vadd.f32 1.0, %v610_v41 }
 0x992   :  { %611 = vrcp.f32 %v338_v42 }
 0x998   :  { %v612_v43 = vpop.eup %611 }
 0x999   :  { %v341_v47 = vmul.f32 %v612_v43, %v303_v28 }
 0x9fe   :  { %v344_v44 = vpop.permute.xlu1 %343 }
 0x9ff   :  { %v346_v45 = vmul.f32 %v612_v43, %v344_v44 }
 0xa01   :  { %348 = vrot.lane.b32.xlu2 %v346_v45, %s640_s23 }
 0xa09   :  { %77 = vperm.xlu2 %568, %v46_v46  }
 0xa5b   :  { %v349_v48 = vpop.permute.xlu2 %348 }
 0xa5c   :  { %v351_v49 = vadd.f32 %v349_v48, %v341_v47 }
 0xa5e   :  { %613 = vtanh.f32 %v351_v49 }
 0xa63   :  { %v78_v54 = vpop.permute.xlu2 %77 }
 0xa64   :  { %v614_v50 = vpop.eup %613  ;;  %v98_v55 = vmul.f32 %v723_v8, %v78_v54 }
 0xa65   :  { %354 = vrot.lane.b32.xlu0 %v614_v50, %s641_s29  ;;  %v504_v50 = vld [vmem:[%s837_s6 + $0x10] sm:$0xff] }
 0xa66   :  { %v110_v56 = vadd.f32 %v729_v11, %v98_v55 }
 0xad7   :  { %v355_v51 = vpop.permute.xlu0 %354 }
 0xad8   :  { %v357_v52 = vmul.f32 %v612_v43, %v355_v51  ;;  %v503_v51 = vld [vmem:[%s837_s6 + $0x8] sm:$0xff] }
 0xada   :  { %359 = vrot.lane.b32.xlu1 %v357_v52, %s640_s23  ;;  %v502_v52 = vld [vmem:[%s837_s6] sm:$0xff] }
 0xb4c   :  { %v360_v53 = vpop.permute.xlu1 %359 }
 0xb4d   :  { %560 = vmatmul.msk.f32.vlgmr.msrb.gmra.mxu1 %vm115_vm0, %v360_v53 }
 0xbca   :  { %v380_v57 = vpop.f32.mrf.mxu1 }
 0xbcb   :  { %v381_v58 = vadd.f32 %v380_v57, %v110_v56  ;;  %v15_v56 = vstv %s840_s9  ;;  %v572_v57 = vld [vmem:[%s838_s7] ss:$0 sm:$0xff] }
 0xbcc   :  { %16 = vst [vmem:[#allocation2] sm:$0x1] %v15_v56 }
 0xbcd   :  { %615 = vtanh.f32 %v381_v58  ;;  %v383_v60 = vsub.f32 0.0, %v381_v58 }
 0xbcf   :  { %v384_v61 = vmul.f32 1.442695, %v383_v60  ;;  %v573_v60 = vld [vmem:[%s839_s8] ss:$0 sm:$0xff] }
 0xbd1   :  { %617 = vpow2.f32 %v384_v61 }
 0xbd3   :  { %v616_v59 = vpop.eup %615 }
 0xbd4   :  { %391 = vrot.lane.b32.xlu0 %v616_v59, %s641_s29 }
 0xbd7   :  { %v618_v62 = vpop.eup %617 }
 0xbd8   :  { %v386_v63 = vadd.f32 1.0, %v618_v62 }
 0xbda   :  { %619 = vrcp.f32 %v386_v63  ;;  %v574_v63 = vld [vmem:[#allocation2] ss:$0 sm:$0xff] }
 0xbe0   :  { %v620_v0 = vpop.eup %619 }
 0xbe1   :  { %v389_v4 = vmul.f32 %v620_v0, %v351_v49  ;;  %v505_v49 = vld [vmem:[%s837_s6 + $0x18] sm:$0xff] }
 0xbe2   :  { %527 = vmatpush.msra.mxu0 %v505_v49 }
 0xbe4   :  { %528 = vmatpush.msra.mxu0 %v504_v50 }
 0xbe6   :  { %529 = vmatpush.msra.mxu0 %v503_v51 }
 0xbe8   :  { %530 = vmatpush.msra.mxu0 %v502_v52 }
 0xc46   :  { %v392_v1 = vpop.permute.xlu0 %391 }
 0xc47   :  { %v394_v2 = vmul.f32 %v620_v0, %v392_v1 }
 0xc49   :  { %396 = vrot.lane.b32.xlu1 %v394_v2, %s640_s23 }
 0xc51   :  { %82 = vperm.xlu1 %569, %v47_v3  }
 0xcbb   :  { %v397_v5 = vpop.permute.xlu1 %396 }
 0xcbc   :  { %v399_v6 = vadd.f32 %v397_v5, %v389_v4 }
 0xcbe   :  { %621 = vtanh.f32 %v399_v6 }
 0xcc3   :  { %v83_v13 = vpop.permute.xlu1 %82 }
 0xcc4   :  { %v622_v7 = vpop.eup %621  ;;  %v99_v14 = vmul.f32 %v723_v8, %v83_v13 }
 0xcc5   :  { %402 = vrot.lane.b32.xlu2 %v622_v7, %s641_s29 }
 0xcc6   :  { %v111_v15 = vadd.f32 %v729_v11, %v99_v14 }
 0xd1f   :  { %v403_v9 = vpop.permute.xlu2 %402 }
 0xd20   :  { %v405_v10 = vmul.f32 %v620_v0, %v403_v9 }
 0xd22   :  { %407 = vrot.lane.b32.xlu0 %v405_v10, %s640_s23 }
 0xd94   :  { %v408_v12 = vpop.permute.xlu0 %407 }
 0xd95   :  { %561 = vmatmul.msk.f32.vlgmr.msrb.gmra.mxu2 %vm115_vm0, %v408_v12 }
 0xe18   :  { %v428_v16 = vpop.f32.mrf.mxu2 }
 0xe19   :  { %v429_v17 = vadd.f32 %v428_v16, %v111_v15 }
 0xe1b   :  { %623 = vtanh.f32 %v429_v17  ;;  %v431_v19 = vsub.f32 0.0, %v429_v17 }
 0xe1d   :  { %v432_v20 = vmul.f32 1.442695, %v431_v19 }
 0xe1f   :  { %625 = vpow2.f32 %v432_v20 }
 0xe21   :  { %v624_v18 = vpop.eup %623 }
 0xe22   :  { %439 = vrot.lane.b32.xlu2 %v624_v18, %s641_s29 }
 0xe25   :  { %v626_v21 = vpop.eup %625 }
 0xe26   :  { %v434_v22 = vadd.f32 1.0, %v626_v21 }
 0xe28   :  { %627 = vrcp.f32 %v434_v22 }
 0xe2e   :  { %v628_v23 = vpop.eup %627 }
 0xe2f   :  { %v437_v27 = vmul.f32 %v628_v23, %v399_v6 }
 0xe7c   :  { %v440_v24 = vpop.permute.xlu2 %439 }
 0xe7d   :  { %v442_v25 = vmul.f32 %v628_v23, %v440_v24 }
 0xe7f   :  { %444 = vrot.lane.b32.xlu0 %v442_v25, %s640_s23 }
 0xe87   :  { %87 = vperm.xlu0 %567, %v48_v26  }
 0xef1   :  { %v445_v28 = vpop.permute.xlu0 %444 }
 0xef2   :  { %v447_v29 = vadd.f32 %v445_v28, %v437_v27 }
 0xef4   :  { %629 = vtanh.f32 %v447_v29 }
 0xef9   :  { %v88_v34 = vpop.permute.xlu0 %87 }
 0xefa   :  { %v630_v30 = vpop.eup %629  ;;  %v100_v35 = vmul.f32 %v723_v8, %v88_v34 }
 0xefb   :  { %450 = vrot.lane.b32.xlu1 %v630_v30, %s641_s29 }
 0xefc   :  { %v112_v36 = vadd.f32 %v729_v11, %v100_v35 }
 0xf6d   :  { %v451_v31 = vpop.permute.xlu1 %450 }
 0xf6e   :  { %v453_v32 = vmul.f32 %v628_v23, %v451_v31 }
 0xf70   :  { %455 = vrot.lane.b32.xlu2 %v453_v32, %s640_s23 }
 0xfca   :  { %v456_v33 = vpop.permute.xlu2 %455 }
 0xfcb   :  { %562 = vmatmul.msk.f32.vlgmr.msrb.gmra.mxu3 %vm115_vm0, %v456_v33 }
0x104e   :  { %v476_v37 = vpop.f32.mrf.mxu3 }
0x104f   :  { %v477_v38 = vadd.f32 %v476_v37, %v112_v36 }
0x1051   :  { %631 = vtanh.f32 %v477_v38  ;;  %v479_v40 = vsub.f32 0.0, %v477_v38 }
0x1053   :  { %v480_v41 = vmul.f32 1.442695, %v479_v40 }
0x1055   :  { %633 = vpow2.f32 %v480_v41 }
0x1057   :  { %v632_v39 = vpop.eup %631 }
0x1058   :  { %487 = vrot.lane.b32.xlu1 %v632_v39, %s641_s29 }
0x105b   :  { %v634_v42 = vpop.eup %633 }
0x105c   :  { %v482_v43 = vadd.f32 1.0, %v634_v42 }
0x105e   :  { %635 = vrcp.f32 %v482_v43 }
0x1064   :  { %v636_v44 = vpop.eup %635 }
0x1065   :  { %v485_v8 = vmul.f32 %v636_v44, %v447_v29 }
0x10ca   :  { %v488_v45 = vpop.permute.xlu1 %487 }
0x10cb   :  { %v490_v46 = vmul.f32 %v636_v44, %v488_v45 }
0x10cd   :  { %492 = vrot.lane.b32.xlu2 %v490_v46, %s640_s23 }
0x1127   :  { %v493_v47 = vpop.permute.xlu2 %492 }
0x1128   :  { %v495_v11 = vadd.f32 %v493_v47, %v485_v8 }
0x112a   :  { %637 = vtanh.f32 %v495_v11 }
0x1130   :  { %v638_v48 = vpop.eup %637 }
0x1131   :  { %498 = vrot.lane.b32.xlu0 %v638_v48, %s641_s29 }
0x11a3   :  { %v499_v53 = vpop.permute.xlu0 %498 }
0x11a4   :  { %v501_v54 = vmul.f32 %v636_v44, %v499_v53 }
0x11a6   :  { %511 = vrot.lane.b32.xlu1 %v501_v54, %s640_s23 }
0x1218   :  { %v512_v55 = vpop.permute.xlu1 %511 }
0x1219   :  { %563 = vmatmul.msk.f32.vlgmr.msra.gmra.mxu0 %vm115_vm0, %v512_v55 }
0x1296   :  { %v532_v58 = vpop.f32.mrf.mxu0 }
0x1297   :  { %v533_v59 = vadd.f32 %v572_v57, %v532_v58 }
0x1299   :  { %v535_v61 = vmax.f32 %v533_v59, 0.0 }
0x129b   :  { %v540_v62 = vmul.f32 %v573_v60, %v535_v61 }
0x129d   :  { %541 = vadd.xlane.f32.xlu2 %v540_v62 }
0x1310   :  { %v542_v0 = vpop.xlane.xlu2 %541 }
0x1311   :  { %v547_v1 = vadd.f32 %v574_v63, %v542_v0 }
0x1313   :  { %v548_v2 = vmax.f32 %v547_v1, 0.0 }
0x1315   :  { %550 = vst.msk [vmem:[%s841_s10] sm:$0xff] %vm549_vm1, %v548_v2 }

</bundles_post_ra>
